<compile_context>
chip_gen: v5e
topology: v5e:2x2
jax: 0.10.0
libtpu: 0.0.40
codegen_flags: <defaults>
</compile_context>

<pallas_src>
import functools

import jax
import jax.numpy as jnp
from jax.experimental import pallas as pl
from jax.experimental.pallas import tpu as pltpu

# Logical sizes (from the PyTorch module) and hardware-friendly padded sizes.
IN_FEATURES = 28 * 28        # 784 (kept un-padded; block last dim == full array dim)
HIDDEN = 200
N_CLASSES = 10
H_PAD = 256                  # 200 -> 256 (MXU / lane aligned)
OUT_PAD = 128                # 10  -> 128 (lane-dense output stores)
DEFAULT_TILE_B = 1024        # good all-round tile; pass tile_b=2048 for very large B on v6e/v7x
VMEM_LIMIT_BYTES = 48 * 1024 * 1024


def _round_up(n, m):
    return ((n + m - 1) // m) * m


def _choose_tile_b(batch, requested):
    """Pick the batch tile.

    - Small batches: one block with rows == B (a full-dim block is always legal, avoids
      sub-packed tiny tiles and multiple grid steps for tiny B).
    - Large batches: at least 2 grid steps (v7x megacore sharding of the "parallel" axis),
      rows a multiple of 16 so f32 inputs and bf16 outputs are cleanly sublane-packed.
    """
    if batch <= 256:
        return batch
    tile = min(requested, _round_up(pl.cdiv(batch, 2), 16))
    return max(tile, 128)


def mlp_kernel(x_ref, w1_ref, b1_ref, w2_ref, b2_ref, w3_ref, b3_ref,
               probs_ref, logits_ref):
    # x: (tile_b, 784) in its native dtype (f32); cast to bf16 in VMEM for the MXU.
    x = x_ref[...].astype(jnp.bfloat16)
    # fc1 + ReLU  (bf16 operands, f32 accumulation)
    h1 = jnp.dot(x, w1_ref[...], preferred_element_type=jnp.float32) + b1_ref[...]
    h1 = jnp.maximum(h1, 0.0).astype(jnp.bfloat16)
    # fc2 + ReLU
    h2 = jnp.dot(h1, w2_ref[...], preferred_element_type=jnp.float32) + b2_ref[...]
    h2 = jnp.maximum(h2, 0.0).astype(jnp.bfloat16)
    # fc4 (logits); pad lanes (>= N_CLASSES) are exactly 0 by construction of w3/b3.
    logits = jnp.dot(h2, w3_ref[...], preferred_element_type=jnp.float32) + b3_ref[...]
    logits_ref[...] = logits.astype(logits_ref.dtype)
    # Softmax over the first N_CLASSES lanes only (computed in f32, stored as bf16).
    col = jax.lax.broadcasted_iota(jnp.int32, logits.shape, 1)
    masked = jnp.where(col < N_CLASSES, logits, -jnp.inf)
    m = jnp.max(masked, axis=-1, keepdims=True)
    e = jnp.exp(masked - m)                      # pad lanes -> exp(-inf) == 0
    s = jnp.sum(e, axis=-1, keepdims=True)
    probs_ref[...] = (e / s).astype(probs_ref.dtype)   # exact divide (bandwidth-bound anyway)


def prepare_params(params):
    """Pad only along hidden/class columns (and hidden rows), cast weights to bf16 once."""
    def pad_w(w, rows, cols):
        out = jnp.zeros((rows, cols), jnp.bfloat16)
        return out.at[: w.shape[0], : w.shape[1]].set(w.astype(jnp.bfloat16))

    def pad_b(b, cols):
        out = jnp.zeros((1, cols), jnp.float32)
        return out.at[:, : b.shape[1]].set(b.astype(jnp.float32))

    return {
        "w1": pad_w(params["w1"], IN_FEATURES, H_PAD), "b1": pad_b(params["b1"], H_PAD),
        "w2": pad_w(params["w2"], H_PAD, H_PAD),       "b2": pad_b(params["b2"], H_PAD),
        "w3": pad_w(params["w3"], H_PAD, OUT_PAD),     "b3": pad_b(params["b3"], OUT_PAD),
    }


@functools.partial(jax.jit, static_argnames=("tile_b", "full_lanes"))
def mlp_forward(x_nchw, padded_params, *, tile_b=DEFAULT_TILE_B, full_lanes=False):
    """x_nchw: (B, 1, 28, 28) -> {'probs', 'logits'}.

    full_lanes=False: (B, 10) f32 outputs (matches the PyTorch module).
    full_lanes=True:  lane-dense (B, 128) bf16 outputs (lanes >= 10 are pad), skipping the
                      post-kernel slice for bandwidth-sensitive consumers.
    """
    B = x_nchw.shape[0]
    x_flat = x_nchw.reshape(B, IN_FEATURES)          # free metadata reshape, no dtype change
    tb = _choose_tile_b(B, tile_b)
    grid = (pl.cdiv(B, tb),)                          # ragged last block handled by Pallas

    p = padded_params
    probs, logits = pl.pallas_call(
        mlp_kernel,
        grid=grid,
        in_specs=[
            pl.BlockSpec((tb, IN_FEATURES), lambda i: (i, 0)),       # x: streamed per tile
            pl.BlockSpec((IN_FEATURES, H_PAD), lambda i: (0, 0)),    # w1: resident
            pl.BlockSpec((1, H_PAD), lambda i: (0, 0)),              # b1
            pl.BlockSpec((H_PAD, H_PAD), lambda i: (0, 0)),          # w2
            pl.BlockSpec((1, H_PAD), lambda i: (0, 0)),              # b2
            pl.BlockSpec((H_PAD, OUT_PAD), lambda i: (0, 0)),        # w3
            pl.BlockSpec((1, OUT_PAD), lambda i: (0, 0)),            # b3
        ],
        out_specs=(
            pl.BlockSpec((tb, OUT_PAD), lambda i: (i, 0)),           # probs (lane-dense bf16)
            pl.BlockSpec((tb, OUT_PAD), lambda i: (i, 0)),           # logits (lane-dense bf16)
        ),
        out_shape=(
            jax.ShapeDtypeStruct((B, OUT_PAD), jnp.bfloat16),
            jax.ShapeDtypeStruct((B, OUT_PAD), jnp.bfloat16),
        ),
        compiler_params=pltpu.CompilerParams(
            dimension_semantics=("parallel",),
            vmem_limit_bytes=VMEM_LIMIT_BYTES,
        ),
    )(x_flat, p["w1"], p["b1"], p["w2"], p["b2"], p["w3"], p["b3"])

    if full_lanes:
        return {"probs": probs, "logits": logits}
    return {
        "probs": probs[:, :N_CLASSES].astype(jnp.float32),
        "logits": logits[:, :N_CLASSES].astype(jnp.float32),
    }


def init_params(key):
    """Deterministic synthetic init (shapes from the PyTorch module __init__)."""
    k1, k2, k3, k4, k5, k6 = jax.random.split(key, 6)

    def lin(kw, kb, fan_in, fan_out):
        bound = 1.0 / jnp.sqrt(fan_in)
        w = jax.random.uniform(kw, (fan_in, fan_out), jnp.float32, -bound, bound)
        b = jax.random.uniform(kb, (1, fan_out), jnp.float32, -bound, bound)
        return w, b

    w1, b1 = lin(k1, k2, IN_FEATURES, HIDDEN)
    w2, b2 = lin(k3, k4, HIDDEN, HIDDEN)
    w3, b3 = lin(k5, k6, HIDDEN, N_CLASSES)
    return {"w1": w1, "b1": b1, "w2": w2, "b2": b2, "w3": w3, "b3": b3}


def _reference(x_nchw, params):
    xf = x_nchw.reshape(x_nchw.shape[0], -1)
    h1 = jnp.maximum(xf @ params["w1"] + params["b1"], 0.0)
    h2 = jnp.maximum(h1 @ params["w2"] + params["b2"], 0.0)
    logits = h2 @ params["w3"] + params["b3"]
    return logits, jax.nn.softmax(logits, axis=-1)


if __name__ == "__main__":
    key = jax.random.PRNGKey(0)
    kx, kp, kx2 = jax.random.split(key, 3)
    params = init_params(kp)
    padded = prepare_params(params)

    # Small MNIST-like batch (single full-dim block, grid of 1).
    x = jax.random.normal(kx, (2, 1, 28, 28), jnp.float32)
    out = mlp_forward(x, padded)
    jax.block_until_ready(out)

    logits_ref, probs_ref = _reference(x, params)
    assert out["logits"].shape == (2, N_CLASSES) and out["probs"].shape == (2, N_CLASSES)
    # bf16 operands/outputs with f32 accumulation -> moderate tolerances vs the f32 reference.
    assert jnp.allclose(out["logits"], logits_ref, atol=5e-2, rtol=5e-2)
    assert jnp.allclose(out["probs"], probs_ref, atol=3e-2, rtol=5e-2)
    assert jnp.allclose(jnp.sum(out["probs"], axis=-1), 1.0, atol=1e-2)

    # Multi-step grid with a ragged (partial) last block: B=300 -> tile 160, grid=2.
    x2 = jax.random.normal(kx2, (300, 1, 28, 28), jnp.float32)
    out2 = mlp_forward(x2, padded)
    jax.block_until_ready(out2)
    logits_ref2, probs_ref2 = _reference(x2, params)
    assert out2["logits"].shape == (300, N_CLASSES)
    assert jnp.allclose(out2["logits"], logits_ref2, atol=5e-2, rtol=5e-2)
    assert jnp.allclose(out2["probs"], probs_ref2, atol=3e-2, rtol=5e-2)
    assert jnp.allclose(jnp.sum(out2["probs"], axis=-1), 1.0, atol=1e-2)

    print("KERNEL_OK")
</pallas_src>

<mosaic_0001>
module attributes {stable_mosaic.version = 11 : i64} {
  func.func @mlp_kernel(%arg0: i32, %arg1: memref<2x784xf32, #tpu.memory_space<vmem>>, %arg2: memref<784x256xbf16, #tpu.memory_space<vmem>>, %arg3: memref<1x256xf32, #tpu.memory_space<vmem>>, %arg4: memref<256x256xbf16, #tpu.memory_space<vmem>>, %arg5: memref<1x256xf32, #tpu.memory_space<vmem>>, %arg6: memref<256x128xbf16, #tpu.memory_space<vmem>>, %arg7: memref<1x128xf32, #tpu.memory_space<vmem>>, %arg8: memref<2x128xbf16, #tpu.memory_space<vmem>>, %arg9: memref<2x128xbf16, #tpu.memory_space<vmem>>) attributes {dimension_semantics = [#tpu.dimension_semantics<parallel>], iteration_bounds = array<i64: 1>, scalar_prefetch = 0 : i64, scratch_operands = 0 : i64, tpu.core_type = #tpu.core_type<tc>, window_params = [{transform_indices = @transform_0, window_bounds = array<i64: 2, 784>}, {pipeline_mode = #tpu.pipeline_mode<synchronous>, transform_indices = @transform_1, window_bounds = array<i64: 784, 256>}, {pipeline_mode = #tpu.pipeline_mode<synchronous>, transform_indices = @transform_2, window_bounds = array<i64: 1, 256>}, {pipeline_mode = #tpu.pipeline_mode<synchronous>, transform_indices = @transform_3, window_bounds = array<i64: 256, 256>}, {pipeline_mode = #tpu.pipeline_mode<synchronous>, transform_indices = @transform_4, window_bounds = array<i64: 1, 256>}, {pipeline_mode = #tpu.pipeline_mode<synchronous>, transform_indices = @transform_5, window_bounds = array<i64: 256, 128>}, {pipeline_mode = #tpu.pipeline_mode<synchronous>, transform_indices = @transform_6, window_bounds = array<i64: 1, 128>}, {transform_indices = @transform_7, window_bounds = array<i64: 2, 128>}, {transform_indices = @transform_8, window_bounds = array<i64: 2, 128>}]} {
    %c0 = arith.constant 0 : index
    %c0_0 = arith.constant 0 : index
    %0 = vector.load %arg1[%c0, %c0_0] : memref<2x784xf32, #tpu.memory_space<vmem>>, vector<2x784xf32>
    %1 = arith.truncf %0 : vector<2x784xf32> to vector<2x784xbf16>
    %c0_1 = arith.constant 0 : index
    %c0_2 = arith.constant 0 : index
    %2 = vector.load %arg2[%c0_1, %c0_2] : memref<784x256xbf16, #tpu.memory_space<vmem>>, vector<784x256xbf16>
    %cst = arith.constant dense<0.000000e+00> : vector<2x256xf32>
    %3 = tpu.matmul %1, %2, %cst {dimension_numbers = #tpu.dot_dimension_numbers<[1], [0], [0], [1], [0, 0, 1, 1], [], []>} : vector<2x784xbf16>, vector<784x256xbf16>, vector<2x256xf32> -> vector<2x256xf32>
    %c0_3 = arith.constant 0 : index
    %c0_4 = arith.constant 0 : index
    %4 = vector.load %arg3[%c0_3, %c0_4] : memref<1x256xf32, #tpu.memory_space<vmem>>, vector<1x256xf32>
    %5 = vector.broadcast %4 : vector<1x256xf32> to vector<2x256xf32>
    %6 = arith.addf %3, %5 : vector<2x256xf32>
    %cst_5 = arith.constant 0.000000e+00 : f32
    %7 = vector.broadcast %cst_5 : f32 to vector<2x256xf32>
    %8 = arith.maximumf %6, %7 : vector<2x256xf32>
    %9 = arith.truncf %8 : vector<2x256xf32> to vector<2x256xbf16>
    %c0_6 = arith.constant 0 : index
    %c0_7 = arith.constant 0 : index
    %10 = vector.load %arg4[%c0_6, %c0_7] : memref<256x256xbf16, #tpu.memory_space<vmem>>, vector<256x256xbf16>
    %cst_8 = arith.constant dense<0.000000e+00> : vector<2x256xf32>
    %11 = tpu.matmul %9, %10, %cst_8 {dimension_numbers = #tpu.dot_dimension_numbers<[1], [0], [0], [1], [0, 0, 1, 1], [], []>} : vector<2x256xbf16>, vector<256x256xbf16>, vector<2x256xf32> -> vector<2x256xf32>
    %c0_9 = arith.constant 0 : index
    %c0_10 = arith.constant 0 : index
    %12 = vector.load %arg5[%c0_9, %c0_10] : memref<1x256xf32, #tpu.memory_space<vmem>>, vector<1x256xf32>
    %13 = vector.broadcast %12 : vector<1x256xf32> to vector<2x256xf32>
    %14 = arith.addf %11, %13 : vector<2x256xf32>
    %cst_11 = arith.constant 0.000000e+00 : f32
    %15 = vector.broadcast %cst_11 : f32 to vector<2x256xf32>
    %16 = arith.maximumf %14, %15 : vector<2x256xf32>
    %17 = arith.truncf %16 : vector<2x256xf32> to vector<2x256xbf16>
    %c0_12 = arith.constant 0 : index
    %c0_13 = arith.constant 0 : index
    %18 = vector.load %arg6[%c0_12, %c0_13] : memref<256x128xbf16, #tpu.memory_space<vmem>>, vector<256x128xbf16>
    %cst_14 = arith.constant dense<0.000000e+00> : vector<2x128xf32>
    %19 = tpu.matmul %17, %18, %cst_14 {dimension_numbers = #tpu.dot_dimension_numbers<[1], [0], [0], [1], [0, 0, 1, 1], [], []>} : vector<2x256xbf16>, vector<256x128xbf16>, vector<2x128xf32> -> vector<2x128xf32>
    %c0_15 = arith.constant 0 : index
    %c0_16 = arith.constant 0 : index
    %20 = vector.load %arg7[%c0_15, %c0_16] : memref<1x128xf32, #tpu.memory_space<vmem>>, vector<1x128xf32>
    %21 = vector.broadcast %20 : vector<1x128xf32> to vector<2x128xf32>
    %22 = arith.addf %19, %21 : vector<2x128xf32>
    %23 = arith.truncf %22 : vector<2x128xf32> to vector<2x128xbf16>
    %c0_17 = arith.constant 0 : index
    %c0_18 = arith.constant 0 : index
    %24 = vector.load %arg9[%c0_17, %c0_18] : memref<2x128xbf16, #tpu.memory_space<vmem>>, vector<2x128xbf16>
    tpu.vector_store %arg9[%c0_17, %c0_18], %23 {strides = array<i32>} : memref<2x128xbf16, #tpu.memory_space<vmem>>, vector<2x128xbf16>,
    %25 = tpu.iota {dimensions = array<i32: 1>} : vector<2x128xi32>
    %c10_i32 = arith.constant 10 : i32
    %26 = vector.broadcast %c10_i32 : i32 to vector<2x128xi32>
    %27 = arith.cmpi slt, %25, %26 : vector<2x128xi32>
    %cst_19 = arith.constant 0xFF800000 : f32
    %28 = vector.broadcast %cst_19 : f32 to vector<2x128xf32>
    %29 = arith.select %27, %22, %28 : vector<2x128xi1>, vector<2x128xf32>
    %cst_20 = arith.constant dense<0xFF800000> : vector<2xf32>
    %30 = vector.multi_reduction <maximumf>, %29, %cst_20 [1] : vector<2x128xf32> to vector<2xf32>
    %31 = vector.shape_cast %30 : vector<2xf32> to vector<2x1xf32>
    %32 = vector.broadcast %31 : vector<2x1xf32> to vector<2x128xf32>
    %33 = arith.subf %29, %32 : vector<2x128xf32>
    %34 = math.exp %33 : vector<2x128xf32>
    %cst_21 = arith.constant dense<0.000000e+00> : vector<2xf32>
    %35 = vector.multi_reduction <add>, %34, %cst_21 [1] : vector<2x128xf32> to vector<2xf32>
    %36 = vector.shape_cast %35 : vector<2xf32> to vector<2x1xf32>
    %37 = vector.broadcast %36 : vector<2x1xf32> to vector<2x128xf32>
    %38 = arith.divf %34, %37 : vector<2x128xf32>
    %39 = arith.truncf %38 : vector<2x128xf32> to vector<2x128xbf16>
    %c0_22 = arith.constant 0 : index
    %c0_23 = arith.constant 0 : index
    %40 = vector.load %arg8[%c0_22, %c0_23] : memref<2x128xbf16, #tpu.memory_space<vmem>>, vector<2x128xbf16>
    tpu.vector_store %arg8[%c0_22, %c0_23], %39 {strides = array<i32>} : memref<2x128xbf16, #tpu.memory_space<vmem>>, vector<2x128xbf16>,
    return
  }
  func.func @transform_0(%arg0: i32) -> (i32, i32) {
    %c0_i32 = arith.constant 0 : i32
    %c0_i32_0 = arith.constant 0 : i32
    return %arg0, %c0_i32 : i32, i32
  }
  func.func @transform_1(%arg0: i32) -> (i32, i32) {
    %c0_i32 = arith.constant 0 : i32
    %c0_i32_0 = arith.constant 0 : i32
    %c0_i32_1 = arith.constant 0 : i32
    return %c0_i32, %c0_i32_0 : i32, i32
  }
  func.func @transform_2(%arg0: i32) -> (i32, i32) {
    %c0_i32 = arith.constant 0 : i32
    %c0_i32_0 = arith.constant 0 : i32
    %c0_i32_1 = arith.constant 0 : i32
    return %c0_i32, %c0_i32_0 : i32, i32
  }
  func.func @transform_3(%arg0: i32) -> (i32, i32) {
    %c0_i32 = arith.constant 0 : i32
    %c0_i32_0 = arith.constant 0 : i32
    %c0_i32_1 = arith.constant 0 : i32
    return %c0_i32, %c0_i32_0 : i32, i32
  }
  func.func @transform_4(%arg0: i32) -> (i32, i32) {
    %c0_i32 = arith.constant 0 : i32
    %c0_i32_0 = arith.constant 0 : i32
    %c0_i32_1 = arith.constant 0 : i32
    return %c0_i32, %c0_i32_0 : i32, i32
  }
  func.func @transform_5(%arg0: i32) -> (i32, i32) {
    %c0_i32 = arith.constant 0 : i32
    %c0_i32_0 = arith.constant 0 : i32
    %c0_i32_1 = arith.constant 0 : i32
    return %c0_i32, %c0_i32_0 : i32, i32
  }
  func.func @transform_6(%arg0: i32) -> (i32, i32) {
    %c0_i32 = arith.constant 0 : i32
    %c0_i32_0 = arith.constant 0 : i32
    %c0_i32_1 = arith.constant 0 : i32
    return %c0_i32, %c0_i32_0 : i32, i32
  }
  func.func @transform_7(%arg0: i32) -> (i32, i32) {
    %c0_i32 = arith.constant 0 : i32
    %c0_i32_0 = arith.constant 0 : i32
    return %arg0, %c0_i32 : i32, i32
  }
  func.func @transform_8(%arg0: i32) -> (i32, i32) {
    %c0_i32 = arith.constant 0 : i32
    %c0_i32_0 = arith.constant 0 : i32
    return %arg0, %c0_i32 : i32, i32
  }
}

</mosaic_0001>

<bundles_post_ra>
// kernel: mlp_forward.1
= control target key start
LH: loop header
LB: loop body
LE: loop exit
PB: predicated region body
PF: predicated region fallthrough
CT: control target
= control target key end

     0   :  { %14 = vsyncpa [#allocation3], 0  ;;  %s2279_s0 = inlined_call_operand.vmem [shape: f32[2,784], index: 0, kind: input, shape index: {}]   ;;  %s2280_s1 = inlined_call_operand.hbm [shape: bf16[784,256], index: 1, kind: input, shape index: {}]   ;;  %s2281_s2 = inlined_call_operand.vmem [shape: f32[1,256], index: 2, kind: input, shape index: {}]   ;;  %s2282_s3 = inlined_call_operand.hbm [shape: bf16[256,256], index: 3, kind: input, shape index: {}]   ;;  %s2283_s4 = inlined_call_operand.vmem [shape: f32[1,256], index: 4, kind: input, shape index: {}]   ;;  %s2284_s5 = inlined_call_operand.vmem [shape: bf16[256,128], index: 5, kind: input, shape index: {}]   ;;  %s2285_s6 = inlined_call_operand.vmem [shape: f32[1,128], index: 6, kind: input, shape index: {}]   ;;  %s2286_s7 = inlined_call_operand.vmem [shape: bf16[2,128], index: 7, kind: output, shape index: {0}]   ;;  %s2287_s8 = inlined_call_operand.vmem [shape: bf16[2,128], index: 8, kind: output, shape index: {1}]  }
   0x1   :  { %s22_s29 = sshll.u32 %s2280_s1, 4  ;;  %s23_s29 = int_to_ptr.hbm [resolvable:$true] %s22_s29 }
   0x2   :  { %15 = vsyncpa [#allocation5], 0  ;;  %s2121_s30 = smov [#allocation2]   ;;  %s37_s12 = sshll.u32 %s2282_s3, 4  ;;  %s38_s12 = int_to_ptr.hbm [resolvable:$true] %s37_s12 }
   0x3   :  { %s24_s9 = sshll.u32 %s2121_s30, 4  ;;  %s2122_s13 = smov 128   ;;  %s25_s9 = int_to_ptr.vmem [resolvable:$true] %s24_s9 }
   0x4   :  { %s2123_s14 = smov 8   ;;  %s2124_s15 = smov [#allocation4]  }
   0x5   :  { %30 = dma.hbm_to_vmem [thread:$0]  %s23_s29, 12544, %s25_s9, [#allocation3], %s2122_s13, %s2122_s13, %s2123_s14  }
   0x6   :  { %s39_s16 = sshll.u32 %s2124_s15, 4  ;;  %s40_s16 = int_to_ptr.vmem [resolvable:$true] %s39_s16 }
   0x7   :  { %45 = dma.hbm_to_vmem [thread:$0]  %s38_s12, 4096, %s40_s16, [#allocation5], %s2122_s13, %s2122_s13, %s2123_s14  }
   0x8   :  { %2117 = dma.done.wait [#allocation3], 12544  }
   0x9   :  { %2118 = vsyncadd [#allocation3], 4294954752 }
   0xa   :  { %2119 = dma.done.wait [#allocation5], 4096  }
   0xb   :  { %2120 = vsyncadd [#allocation5], 4294963200  ;;  %v1386_v0 = vld [vmem:[#allocation2 + $0x70] sm:$0xf]  ;;  %v1929_v1 = vld [vmem:[#allocation2 + $0x74] sm:$0xf0] }
   0xc   :  { %v1514_v2 = vld [vmem:[#allocation2 + $0x170] sm:$0xf]  ;;  %v1387_v3 = vor.u32 %v1929_v1, %v1386_v0  ;;  %v1961_v4 = vld [vmem:[#allocation2 + $0x174] sm:$0xf0]  ;;  %v1378_v11 = vld [vmem:[#allocation2 + $0x60] sm:$0xf] }
   0xd   :  { %v1578_v5 = vld [vmem:[#allocation2 + $0x1f0] sm:$0xf]  ;;  %v1977_v6 = vld [vmem:[#allocation2 + $0x1f4] sm:$0xf0]  ;;  %v1515_v7 = vor.u32 %v1961_v4, %v1514_v2  ;;  %v1927_v13 = vld [vmem:[#allocation2 + $0x64] sm:$0xf0] }
   0xe   :  { %v1579_v8 = vor.u32 %v1977_v6, %v1578_v5  ;;  %v1450_v9 = vld [vmem:[#allocation2 + $0xf0] sm:$0xf]  ;;  %v1945_v10 = vld [vmem:[#allocation2 + $0xf4] sm:$0xf0]  ;;  %687 = vmatpush.bf16.msra.mxu0 %v1387_v3  ;;  %v1506_v14 = vld [vmem:[#allocation2 + $0x160] sm:$0xf]  ;;  %v1379_v16 = vor.u32 %v1927_v13, %v1378_v11 }
   0xf   :  { %v1451_v12 = vor.u32 %v1945_v10, %v1450_v9  ;;  %v1959_v15 = vld [vmem:[#allocation2 + $0x164] sm:$0xf0]  ;;  %713 = vmatpush.bf16.msra.mxu2 %v1515_v7  ;;  %v1570_v18 = vld [vmem:[#allocation2 + $0x1e0] sm:$0xf]  ;;  %v1370_v23 = vld [vmem:[#allocation2 + $0x50] sm:$0xf] }
  0x10   :  { %726 = vmatpush.bf16.msra.mxu3 %v1579_v8  ;;  %v1507_v17 = vor.u32 %v1959_v15, %v1506_v14  ;;  %v1975_v19 = vld [vmem:[#allocation2 + $0x1e4] sm:$0xf0]  ;;  %v1442_v20 = vld [vmem:[#allocation2 + $0xe0] sm:$0xf]  ;;  %v1925_v24 = vld [vmem:[#allocation2 + $0x54] sm:$0xf0] }
  0x11   :  { %700 = vmatpush.bf16.msra.mxu1 %v1451_v12  ;;  %v1571_v21 = vor.u32 %v1975_v19, %v1570_v18  ;;  %v1943_v22 = vld [vmem:[#allocation2 + $0xe4] sm:$0xf0]  ;;  %v1498_v26 = vld [vmem:[#allocation2 + $0x150] sm:$0xf]  ;;  %v1957_v27 = vld [vmem:[#allocation2 + $0x154] sm:$0xf0]  ;;  %v1371_v29 = vor.u32 %v1925_v24, %v1370_v23 }
  0x12   :  { %v1443_v25 = vor.u32 %v1943_v22, %v1442_v20  ;;  %v1562_v28 = vld [vmem:[#allocation2 + $0x1d0] sm:$0xf]  ;;  %688 = vmatpush.bf16.msra.mxu0 %v1379_v16  ;;  %v1973_v30 = vld [vmem:[#allocation2 + $0x1d4] sm:$0xf0]  ;;  %v1499_v33 = vor.u32 %v1957_v27, %v1498_v26  ;;  %v1362_v35 = vld [vmem:[#allocation2 + $0x40] sm:$0xf] }
  0x13   :  { %v1434_v31 = vld [vmem:[#allocation2 + $0xd0] sm:$0xf]  ;;  %v1941_v32 = vld [vmem:[#allocation2 + $0xd4] sm:$0xf0]  ;;  %714 = vmatpush.bf16.msra.mxu2 %v1507_v17  ;;  %v1563_v34 = vor.u32 %v1973_v30, %v1562_v28  ;;  %v1923_v36 = vld [vmem:[#allocation2 + $0x44] sm:$0xf0] }
  0x14   :  { %727 = vmatpush.bf16.msra.mxu3 %v1571_v21  ;;  %v1490_v37 = vld [vmem:[#allocation2 + $0x140] sm:$0xf]  ;;  %v1435_v38 = vor.u32 %v1941_v32, %v1434_v31  ;;  %v1955_v39 = vld [vmem:[#allocation2 + $0x144] sm:$0xf0]  ;;  %v1363_v44 = vor.u32 %v1923_v36, %v1362_v35  ;;  %v1354_v47 = vld [vmem:[#allocation2 + $0x30] sm:$0xf] }
  0x15   :  { %701 = vmatpush.bf16.msra.mxu1 %v1443_v25  ;;  %v1554_v40 = vld [vmem:[#allocation2 + $0x1c0] sm:$0xf]  ;;  %v1971_v41 = vld [vmem:[#allocation2 + $0x1c4] sm:$0xf0]  ;;  %v1491_v45 = vor.u32 %v1955_v39, %v1490_v37  ;;  %v1921_v48 = vld [vmem:[#allocation2 + $0x34] sm:$0xf0] }
  0x16   :  { %v1426_v42 = vld [vmem:[#allocation2 + $0xc0] sm:$0xf]  ;;  %v1939_v43 = vld [vmem:[#allocation2 + $0xc4] sm:$0xf0]  ;;  %689 = vmatpush.bf16.msra.mxu0 %v1371_v29  ;;  %v1555_v46 = vor.u32 %v1971_v41, %v1554_v40  ;;  %v1482_v49 = vld [vmem:[#allocation2 + $0x130] sm:$0xf]  ;;  %v1355_v56 = vor.u32 %v1921_v48, %v1354_v47 }
  0x17   :  { %715 = vmatpush.bf16.msra.mxu2 %v1499_v33  ;;  %v1427_v50 = vor.u32 %v1939_v43, %v1426_v42  ;;  %v1953_v51 = vld [vmem:[#allocation2 + $0x134] sm:$0xf0]  ;;  %v1546_v52 = vld [vmem:[#allocation2 + $0x1b0] sm:$0xf]  ;;  %v1346_v59 = vld [vmem:[#allocation2 + $0x20] sm:$0xf] }
  0x18   :  { %728 = vmatpush.bf16.msra.mxu3 %v1563_v34  ;;  %v1969_v53 = vld [vmem:[#allocation2 + $0x1b4] sm:$0xf0]  ;;  %v1418_v54 = vld [vmem:[#allocation2 + $0xb0] sm:$0xf]  ;;  %v1483_v57 = vor.u32 %v1953_v51, %v1482_v49  ;;  %v1919_v60 = vld [vmem:[#allocation2 + $0x24] sm:$0xf0] }
  0x19   :  { %702 = vmatpush.bf16.msra.mxu1 %v1435_v38  ;;  %v1937_v55 = vld [vmem:[#allocation2 + $0xb4] sm:$0xf0]  ;;  %v1547_v58 = vor.u32 %v1969_v53, %v1546_v52  ;;  %v1474_v61 = vld [vmem:[#allocation2 + $0x120] sm:$0xf]  ;;  %v1951_v63 = vld [vmem:[#allocation2 + $0x124] sm:$0xf0]  ;;  %v1347_v4 = vor.u32 %v1919_v60, %v1346_v59 }
  0x1a   :  { %690 = vmatpush.bf16.msra.mxu0 %v1363_v44  ;;  %v1419_v62 = vor.u32 %v1937_v55, %v1418_v54  ;;  %v1538_v0 = vld [vmem:[#allocation2 + $0x1a0] sm:$0xf]  ;;  %v1967_v1 = vld [vmem:[#allocation2 + $0x1a4] sm:$0xf0]  ;;  %v1338_v5 = vld [vmem:[#allocation2 + $0x10] sm:$0xf]  ;;  %v1475_v7 = vor.u32 %v1951_v63, %v1474_v61 }
  0x1b   :  { %716 = vmatpush.bf16.msra.mxu2 %v1491_v45  ;;  %v1410_v2 = vld [vmem:[#allocation2 + $0xa0] sm:$0xf]  ;;  %v1935_v3 = vld [vmem:[#allocation2 + $0xa4] sm:$0xf0]  ;;  %v1917_v6 = vld [vmem:[#allocation2 + $0x14] sm:$0xf0]  ;;  %v1539_v8 = vor.u32 %v1967_v1, %v1538_v0 }
  0x1c   :  { %729 = vmatpush.bf16.msra.mxu3 %v1555_v46  ;;  %v1466_v9 = vld [vmem:[#allocation2 + $0x110] sm:$0xf]  ;;  %v1949_v10 = vld [vmem:[#allocation2 + $0x114] sm:$0xf0]  ;;  %v1411_v12 = vor.u32 %v1935_v3, %v1410_v2  ;;  %v1330_v16 = vld [vmem:[#allocation2] sm:$0xf]  ;;  %v1339_v19 = vor.u32 %v1917_v6, %v1338_v5 }
  0x1d   :  { %703 = vmatpush.bf16.msra.mxu1 %v1427_v50  ;;  %v1530_v11 = vld [vmem:[#allocation2 + $0x190] sm:$0xf]  ;;  %v1965_v13 = vld [vmem:[#allocation2 + $0x194] sm:$0xf0]  ;;  %v1915_v17 = vld [vmem:[#allocation2 + $0x4] sm:$0xf0]  ;;  %v1467_v22 = vor.u32 %v1949_v10, %v1466_v9 }
  0x1e   :  { %691 = vmatpush.bf16.msra.mxu0 %v1355_v56  ;;  %v1402_v14 = vld [vmem:[#allocation2 + $0x90] sm:$0xf]  ;;  %v1933_v15 = vld [vmem:[#allocation2 + $0x94] sm:$0xf0]  ;;  %v1458_v20 = vld [vmem:[#allocation2 + $0x100] sm:$0xf]  ;;  %v1531_v23 = vor.u32 %v1965_v13, %v1530_v11  ;;  %v1331_v34 = vor.u32 %v1915_v17, %v1330_v16 }
  0x1f   :  { %717 = vmatpush.bf16.msra.mxu2 %v1483_v57  ;;  %v61_v18 = vld [vmem:[%s2279_s0] sm:$0xff]  ;;  %v1947_v21 = vld [vmem:[#allocation2 + $0x104] sm:$0xf0]  ;;  %v1522_v24 = vld [vmem:[#allocation2 + $0x180] sm:$0xf]  ;;  %v1403_v27 = vor.u32 %v1933_v15, %v1402_v14  ;;  %vm683_vm0 = vcmask 130048  }
  0x20   :  { %730 = vmatpush.bf16.msra.mxu3 %v1547_v58  ;;  %65 = vst [vmem:[#allocation1] ss:$4 sm:$0xff] %v61_v18  ;;  %v1963_v25 = vld [vmem:[#allocation2 + $0x184] sm:$0xf0]  ;;  %v1642_v26 = vld [vmem:[#allocation2 + $0x270] sm:$0xf]  ;;  %v1459_v38 = vor.u32 %v1947_v21, %v1458_v20 }
  0x21   :  { %704 = vmatpush.bf16.msra.mxu1 %v1419_v62  ;;  %v1993_v28 = vld [vmem:[#allocation2 + $0x274] sm:$0xf0]  ;;  %v1928_v29 = vld [vmem:[#allocation2 + $0x74] sm:$0xf]  ;;  %v1388_v30 = vld [vmem:[#allocation2 + $0x78] sm:$0xf0]  ;;  %v1523_v39 = vor.u32 %v1963_v25, %v1522_v24 }
  0x22   :  { %692 = vmatpush.bf16.msra.mxu0 %v1347_v4  ;;  %v1394_v31 = vld [vmem:[#allocation2 + $0x80] sm:$0xf]  ;;  %v1931_v32 = vld [vmem:[#allocation2 + $0x84] sm:$0xf0]  ;;  %v1706_v33 = vld [vmem:[#allocation2 + $0x2f0] sm:$0xf]  ;;  %v1643_v43 = vor.u32 %v1993_v28, %v1642_v26  ;;  %v1391_v44 = vor.u32 %v1928_v29, %v1388_v30 }
  0x23   :  { %718 = vmatpush.bf16.msra.mxu2 %v1475_v7  ;;  %v2009_v35 = vld [vmem:[#allocation2 + $0x2f4] sm:$0xf0]  ;;  %v1714_v36 = vld [vmem:[#allocation2 + $0x300] sm:$0xf]  ;;  %v2011_v37 = vld [vmem:[#allocation2 + $0x304] sm:$0xf0]  ;;  %v1395_v48 = vor.u32 %v1931_v32, %v1394_v31 }
  0x24   :  { %731 = vmatpush.bf16.msra.mxu3 %v1539_v8  ;;  %v1944_v40 = vld [vmem:[#allocation2 + $0xf4] sm:$0xf]  ;;  %v1452_v41 = vld [vmem:[#allocation2 + $0xf8] sm:$0xf0]  ;;  %v1634_v42 = vld [vmem:[#allocation2 + $0x260] sm:$0xf]  ;;  %v1715_v50 = vor.u32 %v2011_v37, %v1714_v36  ;;  %v1707_v53 = vor.u32 %v2009_v35, %v1706_v33 }
  0x25   :  { %705 = vmatpush.bf16.msra.mxu1 %v1411_v12  ;;  %v1991_v45 = vld [vmem:[#allocation2 + $0x264] sm:$0xf0]  ;;  %v1926_v46 = vld [vmem:[#allocation2 + $0x64] sm:$0xf]  ;;  %v1380_v47 = vld [vmem:[#allocation2 + $0x68] sm:$0xf0]  ;;  %v1455_v56 = vor.u32 %v1944_v40, %v1452_v41 }
  0x26   :  { %693 = vmatpush.bf16.msra.mxu0 %v1339_v19  ;;  %v1698_v54 = vld [vmem:[#allocation2 + $0x2e0] sm:$0xf]  ;;  %v2007_v57 = vld [vmem:[#allocation2 + $0x2e4] sm:$0xf0]  ;;  %v1635_v60 = vor.u32 %v1991_v45, %v1634_v42  ;;  %v1383_v61 = vor.u32 %v1926_v46, %v1380_v47  ;;  %v1942_v62 = vld [vmem:[#allocation2 + $0xe4] sm:$0xf] }
  0x27   :  { %719 = vmatpush.bf16.msra.mxu2 %v1467_v22  ;;  %v70_v49 = vld.sshfl [vmem:[#allocation1 + $0x10] sm:$0xff pattern:$0x73625140]  ;;  %v68_v51 = vld.sshfl [vmem:[#allocation1] sm:$0xff pattern:$0x73625140]  ;;  %v1699_v6 = vor.u32 %v2007_v57, %v1698_v54 }
  0x28   :  { %732 = vmatpush.bf16.msra.mxu3 %v1531_v23  ;;  %v2179_v52 = vpack.c.bf16 %v70_v49, %v70_v49  ;;  %v71_v55 = vld.sshfl [vmem:[#allocation1 + $0x18] sm:$0xff pattern:$0x73625140]  ;;  %v2181_v58 = vpack.c.bf16 %v68_v51, %v68_v51  ;;  %v69_v59 = vld.sshfl [vmem:[#allocation1 + $0x8] sm:$0xff pattern:$0x73625140] }
  0x29   :  { %706 = vmatpush.bf16.msra.mxu1 %v1403_v27  ;;  %v1444_v63 = vld [vmem:[#allocation2 + $0xe8] sm:$0xf0]  ;;  %v1626_v0 = vld [vmem:[#allocation2 + $0x250] sm:$0xf]  ;;  %v1989_v1 = vld [vmem:[#allocation2 + $0x254] sm:$0xf0]  ;;  %v2183_v4 = vpack.c.bf16 %v71_v55, %v71_v55  ;;  %v2185_v5 = vpack.c.bf16 %v69_v59, %v69_v59 }
  0x2a   :  { %694 = vmatpush.bf16.msra.mxu0 %v1331_v34  ;;  %v1924_v2 = vld [vmem:[#allocation2 + $0x54] sm:$0xf]  ;;  %v1372_v3 = vld [vmem:[#allocation2 + $0x58] sm:$0xf0]  ;;  %v1447_v7 = vor.u32 %v1942_v62, %v1444_v63  ;;  %v1690_v8 = vld [vmem:[#allocation2 + $0x2d0] sm:$0xf]  ;;  %v1627_v10 = vor.u32 %v1989_v1, %v1626_v0 }
  0x2b   :  { %720 = vmatpush.bf16.msra.mxu2 %v1459_v38  ;;  %v2005_v9 = vld [vmem:[#allocation2 + $0x2d4] sm:$0xf0]  ;;  %v1375_v11 = vor.u32 %v1924_v2, %v1372_v3  ;;  %v1940_v12 = vld [vmem:[#allocation2 + $0xd4] sm:$0xf]  ;;  %v1436_v13 = vld [vmem:[#allocation2 + $0xd8] sm:$0xf0] }
  0x2c   :  { %733 = vmatpush.bf16.msra.mxu3 %v1523_v39  ;;  %v1618_v14 = vld [vmem:[#allocation2 + $0x240] sm:$0xf]  ;;  %v1987_v15 = vld [vmem:[#allocation2 + $0x244] sm:$0xf0]  ;;  %v1922_v16 = vld [vmem:[#allocation2 + $0x44] sm:$0xf]  ;;  %v1691_v18 = vor.u32 %v2005_v9, %v1690_v8  ;;  %v1439_v19 = vor.u32 %v1940_v12, %v1436_v13 }
  0x2d   :  { %707 = vmatpush.bf16.msra.mxu1 %v1395_v48  ;;  %695 = vmatmul.bf16.vlgmr.msra.gmra.mxu0 %v2181_v58  ;;  %v1364_v17 = vld [vmem:[#allocation2 + $0x48] sm:$0xf0]  ;;  %v1682_v20 = vld [vmem:[#allocation2 + $0x2c0] sm:$0xf]  ;;  %v2003_v21 = vld [vmem:[#allocation2 + $0x2c4] sm:$0xf0]  ;;  %v1619_v22 = vor.u32 %v1987_v15, %v1618_v14 }
  0x2e   :  { %739 = vmatpush.bf16.msrb.mxu0 %v1643_v43  ;;  %721 = vmatmul.bf16.vlgmr.msra.gmra.mxu2 %v2179_v52  ;;  %v1367_v23 = vor.u32 %v1922_v16, %v1364_v17  ;;  %v1938_v24 = vld [vmem:[#allocation2 + $0xc4] sm:$0xf]  ;;  %v1428_v25 = vld [vmem:[#allocation2 + $0xc8] sm:$0xf0]  ;;  %v1610_v26 = vld [vmem:[#allocation2 + $0x230] sm:$0xf]  ;;  %v1683_v30 = vor.u32 %v2003_v21, %v1682_v20 }
  0x2f   :  { %772 = vmatpush.bf16.msrb.mxu2 %v1715_v50  ;;  %734 = vmatmul.bf16.vlgmr.msra.gmra.mxu3 %v2183_v4  ;;  %v1985_v27 = vld [vmem:[#allocation2 + $0x234] sm:$0xf0]  ;;  %v1920_v28 = vld [vmem:[#allocation2 + $0x34] sm:$0xf]  ;;  %v1356_v29 = vld [vmem:[#allocation2 + $0x38] sm:$0xf0]  ;;  %v1431_v32 = vor.u32 %v1938_v24, %v1428_v25 }
  0x30   :  { %778 = vmatpush.bf16.msrb.mxu3 %v1391_v44  ;;  %708 = vmatmul.bf16.vlgmr.msra.gmra.mxu1 %v2185_v5  ;;  %v1674_v31 = vld [vmem:[#allocation2 + $0x2b0] sm:$0xf]  ;;  %v2001_v33 = vld [vmem:[#allocation2 + $0x2b4] sm:$0xf0]  ;;  %v1936_v34 = vld [vmem:[#allocation2 + $0xb4] sm:$0xf]  ;;  %v1611_v36 = vor.u32 %v1985_v27, %v1610_v26  ;;  %v1359_v37 = vor.u32 %v1920_v28, %v1356_v29 }
  0x31   :  { %752 = vmatpush.bf16.msrb.mxu1 %v1707_v53  ;;  %v62_v35 = vld [vmem:[%s2279_s0 + $0x8] sm:$0x3f]  ;;  %v1420_v38 = vld [vmem:[#allocation2 + $0xb8] sm:$0xf0]  ;;  %v1983_v40 = vld [vmem:[#allocation2 + $0x224] sm:$0xf0]  ;;  %v1675_v43 = vor.u32 %v2001_v33, %v1674_v31 }
  0x32   :  { %740 = vmatpush.bf16.msrb.mxu0 %v1635_v60  ;;  %v1602_v39 = vld [vmem:[#allocation2 + $0x220] sm:$0xf]  ;;  %67 = vst [vmem:[#allocation1 + $0x20] ss:$4 sm:$0xff] %v62_v35  ;;  %v1918_v41 = vld [vmem:[#allocation2 + $0x24] sm:$0xf]  ;;  %v1423_v44 = vor.u32 %v1936_v34, %v1420_v38 }
  0x33   :  { %791 = vmatpush.bf16.msra.mxu2 %v1455_v56  ;;  %v1348_v42 = vld [vmem:[#allocation2 + $0x28] sm:$0xf0]  ;;  %v1666_v45 = vld [vmem:[#allocation2 + $0x2a0] sm:$0xf]  ;;  %v1999_v46 = vld [vmem:[#allocation2 + $0x2a4] sm:$0xf0]  ;;  %v1603_v48 = vor.u32 %v1983_v40, %v1602_v39 }
  0x34   :  { %779 = vmatpush.bf16.msrb.mxu3 %v1383_v61  ;;  %v1934_v47 = vld [vmem:[#allocation2 + $0xa4] sm:$0xf]  ;;  %v1351_v49 = vor.u32 %v1918_v41, %v1348_v42  ;;  %v1412_v50 = vld [vmem:[#allocation2 + $0xa8] sm:$0xf0]  ;;  %v1594_v51 = vld [vmem:[#allocation2 + $0x210] sm:$0xf]  ;;  %v1667_v57 = vor.u32 %v1999_v46, %v1666_v45 }
  0x35   :  { %753 = vmatpush.bf16.msrb.mxu1 %v1699_v6  ;;  %v1981_v53 = vld [vmem:[#allocation2 + $0x214] sm:$0xf0]  ;;  %v1916_v54 = vld [vmem:[#allocation2 + $0x14] sm:$0xf]  ;;  %v1340_v55 = vld [vmem:[#allocation2 + $0x18] sm:$0xf0]  ;;  %v1415_v62 = vor.u32 %v1934_v47, %v1412_v50 }
  0x36   :  { %741 = vmatpush.bf16.msrb.mxu0 %v1627_v10  ;;  %v1658_v56 = vld [vmem:[#allocation2 + $0x290] sm:$0xf]  ;;  %v1997_v59 = vld [vmem:[#allocation2 + $0x294] sm:$0xf0]  ;;  %v1932_v60 = vld [vmem:[#allocation2 + $0x94] sm:$0xf]  ;;  %v1595_v1 = vor.u32 %v1981_v53, %v1594_v51  ;;  %v1343_v2 = vor.u32 %v1916_v54, %v1340_v55 }
  0x37   :  { %792 = vmatpush.bf16.msra.mxu2 %v1447_v7  ;;  %v1404_v61 = vld [vmem:[#allocation2 + $0x98] sm:$0xf0]  ;;  %v1586_v63 = vld [vmem:[#allocation2 + $0x200] sm:$0xf]  ;;  %v1979_v3 = vld [vmem:[#allocation2 + $0x204] sm:$0xf0]  ;;  %v1659_v12 = vor.u32 %v1997_v59, %v1658_v56 }
  0x38   :  { %780 = vmatpush.bf16.msrb.mxu3 %v1375_v11  ;;  %v1914_v7 = vld [vmem:[#allocation2 + $0x4] sm:$0xf]  ;;  %v1332_v8 = vld [vmem:[#allocation2 + $0x8] sm:$0xf0]  ;;  %v1960_v9 = vld [vmem:[#allocation2 + $0x174] sm:$0xf]  ;;  %v1407_v16 = vor.u32 %v1932_v60, %v1404_v61  ;;  %v1587_v20 = vor.u32 %v1979_v3, %v1586_v63 }
  0x39   :  { %754 = vmatpush.bf16.msrb.mxu1 %v1691_v18  ;;  %v74_v0 = vld.sshfl [vmem:[#allocation1 + $0x30] sm:$0xff pattern:$0x73625140]  ;;  %v1516_v10 = vld [vmem:[#allocation2 + $0x178] sm:$0xf0]  ;;  %v1335_v21 = vor.u32 %v1914_v7, %v1332_v8  ;;  %vm1291_vm2 = vcmask 1041408  }
  0x3a   :  { %742 = vmatpush.bf16.msrb.mxu0 %v1619_v22  ;;  %v2194_v6 = vpack.c.bf16 %v74_v0, %v74_v0  ;;  %v1992_v11 = vld [vmem:[#allocation2 + $0x274] sm:$0xf]  ;;  %v1644_v13 = vld [vmem:[#allocation2 + $0x278] sm:$0xf0]  ;;  %v1650_v14 = vld [vmem:[#allocation2 + $0x280] sm:$0xf]  ;;  %v1519_v24 = vor.u32 %v1960_v9, %v1516_v10 }
  0x3b   :  { %793 = vmatpush.bf16.msra.mxu2 %v1439_v19  ;;  %v1995_v15 = vld [vmem:[#allocation2 + $0x284] sm:$0xf0]  ;;  %v1930_v17 = vld [vmem:[#allocation2 + $0x84] sm:$0xf]  ;;  %v1396_v18 = vld [vmem:[#allocation2 + $0x88] sm:$0xf0]  ;;  %v1647_v25 = vor.u32 %v1992_v11, %v1644_v13 }
  0x3c   :  { %781 = vmatpush.bf16.msrb.mxu3 %v1367_v23  ;;  %v1976_v19 = vld [vmem:[#allocation2 + $0x1f4] sm:$0xf]  ;;  %v72_v22 = vld.sshfl [vmem:[#allocation1 + $0x20] sm:$0xff pattern:$0x73625140]  ;;  %v1651_v29 = vor.u32 %v1995_v15, %v1650_v14  ;;  %v1399_v33 = vor.u32 %v1930_v17, %v1396_v18 }
  0x3d   :  { %755 = vmatpush.bf16.msrb.mxu1 %v1683_v30  ;;  %v1580_v23 = vld [vmem:[#allocation2 + $0x1f8] sm:$0xf0]  ;;  %v2008_v26 = vld [vmem:[#allocation2 + $0x2f4] sm:$0xf]  ;;  %v1958_v28 = vld [vmem:[#allocation2 + $0x164] sm:$0xf] }
  0x3e   :  { %743 = vmatpush.bf16.msrb.mxu0 %v1611_v36  ;;  %1720 = vmatmul.msk.bf16.vlgmr.msrb.gmra.mxu2 %vm683_vm0, %v2194_v6  ;;  %v1708_v27 = vld [vmem:[#allocation2 + $0x2f8] sm:$0xf0]  ;;  %v73_v30 = vld.sshfl [vmem:[#allocation1 + $0x28] sm:$0xff pattern:$0x73625140]  ;;  %v1583_v36 = vor.u32 %v1976_v19, %v1580_v23 }
  0x3f   :  { %794 = vmatpush.bf16.msra.mxu2 %v1431_v32  ;;  %v1508_v31 = vld [vmem:[#allocation2 + $0x168] sm:$0xf0]  ;;  %v2198_v32 = vpack.c.bf16 %v72_v22, %v72_v22  ;;  %v1990_v34 = vld [vmem:[#allocation2 + $0x264] sm:$0xf]  ;;  %v2200_v39 = vpack.c.bf16 %v73_v30, %v73_v30  ;;  %v1956_v45 = vld [vmem:[#allocation2 + $0x154] sm:$0xf] }
  0x40   :  { %782 = vmatpush.bf16.msrb.mxu3 %v1359_v37  ;;  %v1636_v35 = vld [vmem:[#allocation2 + $0x268] sm:$0xf0]  ;;  %v1711_v37 = vor.u32 %v2008_v26, %v1708_v27  ;;  %v1974_v38 = vld [vmem:[#allocation2 + $0x1e4] sm:$0xf]  ;;  %v1511_v40 = vor.u32 %v1958_v28, %v1508_v31  ;;  %v1500_v46 = vld [vmem:[#allocation2 + $0x158] sm:$0xf0] }
  0x41   :  { %756 = vmatpush.bf16.msrb.mxu1 %v1675_v43  ;;  %v1572_v41 = vld [vmem:[#allocation2 + $0x1e8] sm:$0xf0]  ;;  %v2006_v42 = vld [vmem:[#allocation2 + $0x2e4] sm:$0xf]  ;;  %v1988_v47 = vld [vmem:[#allocation2 + $0x254] sm:$0xf]  ;;  %v1503_v53 = vor.u32 %v1956_v45, %v1500_v46 }
  0x42   :  { %744 = vmatpush.bf16.msrb.mxu0 %v1603_v48  ;;  %v1700_v43 = vld [vmem:[#allocation2 + $0x2e8] sm:$0xf0]  ;;  %v1628_v48 = vld [vmem:[#allocation2 + $0x258] sm:$0xf0]  ;;  %v1972_v51 = vld [vmem:[#allocation2 + $0x1d4] sm:$0xf] }
  0x43   :  { %795 = vmatpush.bf16.msra.mxu2 %v1423_v44  ;;  %v1639_v44 = vor.u32 %v1990_v34, %v1636_v35  ;;  %v1703_v50 = vor.u32 %v2006_v42, %v1700_v43  ;;  %v1564_v54 = vld [vmem:[#allocation2 + $0x1d8] sm:$0xf0]  ;;  %v2004_v55 = vld [vmem:[#allocation2 + $0x2d4] sm:$0xf]  ;;  %v1954_v59 = vld [vmem:[#allocation2 + $0x144] sm:$0xf] }
  0x44   :  { %783 = vmatpush.bf16.msrb.mxu3 %v1351_v49  ;;  %v1575_v49 = vor.u32 %v1974_v38, %v1572_v41  ;;  %v1692_v56 = vld [vmem:[#allocation2 + $0x2d8] sm:$0xf0]  ;;  %v1492_v60 = vld [vmem:[#allocation2 + $0x148] sm:$0xf0]  ;;  %v1986_v61 = vld [vmem:[#allocation2 + $0x244] sm:$0xf]  ;;  %v1567_v63 = vor.u32 %v1972_v51, %v1564_v54 }
  0x45   :  { %757 = vmatpush.bf16.msrb.mxu1 %v1667_v57  ;;  %v1631_v57 = vor.u32 %v1988_v47, %v1628_v48  ;;  %v1695_v0 = vor.u32 %v2004_v55, %v1692_v56  ;;  %v1495_v3 = vor.u32 %v1954_v59, %v1492_v60  ;;  %v2002_v7 = vld [vmem:[#allocation2 + $0x2c4] sm:$0xf]  ;;  %v1684_v8 = vld [vmem:[#allocation2 + $0x2c8] sm:$0xf0]  ;;  %v1952_v10 = vld [vmem:[#allocation2 + $0x134] sm:$0xf] }
  0x46   :  { %745 = vmatpush.bf16.msrb.mxu0 %v1595_v1  ;;  %v1970_v1 = vld [vmem:[#allocation2 + $0x1c4] sm:$0xf]  ;;  %v1484_v11 = vld [vmem:[#allocation2 + $0x138] sm:$0xf0]  ;;  %v1687_v14 = vor.u32 %v2002_v7, %v1684_v8  ;;  %v1968_v15 = vld [vmem:[#allocation2 + $0x1b4] sm:$0xf] }
  0x47   :  { %796 = vmatpush.bf16.msra.mxu2 %v1415_v62  ;;  %v1620_v62 = vld [vmem:[#allocation2 + $0x248] sm:$0xf0]  ;;  %v1612_v13 = vld [vmem:[#allocation2 + $0x238] sm:$0xf0]  ;;  %v2000_v18 = vld [vmem:[#allocation2 + $0x2b4] sm:$0xf] }
  0x48   :  { %784 = vmatpush.bf16.msrb.mxu3 %v1343_v2  ;;  %v1556_v2 = vld [vmem:[#allocation2 + $0x1c8] sm:$0xf0]  ;;  %v1623_v9 = vor.u32 %v1986_v61, %v1620_v62  ;;  %v1548_v17 = vld [vmem:[#allocation2 + $0x1b8] sm:$0xf0]  ;;  %v1982_v23 = vld [vmem:[#allocation2 + $0x224] sm:$0xf] }
  0x49   :  { %758 = vmatpush.bf16.msrb.mxu1 %v1659_v12  ;;  %v1984_v12 = vld [vmem:[#allocation2 + $0x234] sm:$0xf]  ;;  %v1676_v19 = vld [vmem:[#allocation2 + $0x2b8] sm:$0xf0]  ;;  %v1476_v22 = vld [vmem:[#allocation2 + $0x128] sm:$0xf0] }
  0x4a   :  { %746 = vmatpush.bf16.msrb.mxu0 %v1587_v20  ;;  %v1615_v20 = vor.u32 %v1984_v12, %v1612_v13  ;;  %v1966_v26 = vld [vmem:[#allocation2 + $0x1a4] sm:$0xf]  ;;  %v1540_v28 = vld [vmem:[#allocation2 + $0x1a8] sm:$0xf0]  ;;  %v1468_v34 = vld [vmem:[#allocation2 + $0x118] sm:$0xf0] }
  0x4b   :  { %797 = vmatpush.bf16.msra.mxu2 %v1407_v16  ;;  %v1487_v16 = vor.u32 %v1952_v10, %v1484_v11  ;;  %v1668_v30 = vld [vmem:[#allocation2 + $0x2a8] sm:$0xf0]  ;;  %v1980_v35 = vld [vmem:[#allocation2 + $0x214] sm:$0xf]  ;;  %v1532_v42 = vld [vmem:[#allocation2 + $0x198] sm:$0xf0] }
  0x4c   :  { %785 = vmatpush.bf16.msrb.mxu3 %v1335_v21  ;;  %v1950_v21 = vld [vmem:[#allocation2 + $0x124] sm:$0xf]  ;;  %v1996_v43 = vld [vmem:[#allocation2 + $0x294] sm:$0xf]  ;;  %v1460_v47 = vld [vmem:[#allocation2 + $0x108] sm:$0xf0] }
  0x4d   :  { %759 = vmatpush.bf16.msrb.mxu1 %v1651_v29  ;;  %747 = vmatmul.bf16.vlgmr.msrb.gmra.mxu0 %v2198_v32  ;;  %v1479_v27 = vor.u32 %v1950_v21, %v1476_v22  ;;  %v1998_v29 = vld [vmem:[#allocation2 + $0x2a4] sm:$0xf]  ;;  %v1716_v51 = vld [vmem:[#allocation2 + $0x308] sm:$0xf0]  ;;  %v1772_v10 = vld [vmem:[#allocation4 + $0x60] sm:$0xf] }
  0x4e   :  { %804 = vmatpush.bf16.msra.mxu0 %v1519_v24  ;;  %v1551_v24 = vor.u32 %v1968_v15, %v1548_v17  ;;  %v1671_v38 = vor.u32 %v1998_v29, %v1668_v30  ;;  %v1946_v46 = vld [vmem:[#allocation2 + $0x104] sm:$0xf]  ;;  %v1652_v61 = vld [vmem:[#allocation2 + $0x288] sm:$0xf0]  ;;  %v2025_v11 = vld [vmem:[#allocation4 + $0x64] sm:$0xf0] }
  0x4f   :  { %798 = vmatpush.bf16.msra.mxu2 %v1399_v33  ;;  %786 = vmatmul.bf16.vlgmr.msrb.gmra.mxu3 %v2181_v58  ;;  %v1559_v58 = vor.u32 %v1970_v1, %v1556_v2  ;;  %v1948_v33 = vld [vmem:[#allocation2 + $0x114] sm:$0xf]  ;;  %v1978_v48 = vld [vmem:[#allocation2 + $0x204] sm:$0xf]  ;;  %v1463_v55 = vor.u32 %v1946_v46, %v1460_v47  ;;  %v1780_v1 = vld [vmem:[#allocation4 + $0x70] sm:$0xf] }
  0x50   :  { %830 = vmatpush.bf16.msra.mxu3 %v1647_v25  ;;  %760 = vmatmul.bf16.vlgmr.msrb.gmra.mxu1 %v2200_v39  ;;  %v1679_v25 = vor.u32 %v2000_v18, %v1676_v19  ;;  %v1471_v41 = vor.u32 %v1948_v33, %v1468_v34  ;;  %v1962_v56 = vld [vmem:[#allocation2 + $0x184] sm:$0xf]  ;;  %v2027_v2 = vld [vmem:[#allocation4 + $0x74] sm:$0xf0]  ;;  %v1782_v8 = vld [vmem:[#allocation4 + $0x78] sm:$0xf0] }
  0x51   :  { %817 = vmatpush.bf16.msra.mxu1 %v1583_v36  ;;  %v1596_v36 = vld [vmem:[#allocation2 + $0x218] sm:$0xf0]  ;;  %v1994_v60 = vld [vmem:[#allocation2 + $0x284] sm:$0xf]  ;;  %v2024_v12 = vld [vmem:[#allocation4 + $0x64] sm:$0xf] }
  0x52   :  { %805 = vmatpush.bf16.msra.mxu0 %v1511_v40  ;;  %799 = vmatmul.bf16.vlgmr.msra.gmra.mxu2 %v2185_v5  ;;  %v1604_v5 = vld [vmem:[#allocation2 + $0x228] sm:$0xf0]  ;;  %v1964_v40 = vld [vmem:[#allocation2 + $0x194] sm:$0xf]  ;;  %v1599_v45 = vor.u32 %v1980_v35, %v1596_v36  ;;  %v2026_v7 = vld [vmem:[#allocation4 + $0x74] sm:$0xf] }
  0x53   :  { %843 = vmatpush.bf16.msrb.mxu2 %v1711_v37  ;;  %v1607_v31 = vor.u32 %v1982_v23, %v1604_v5  ;;  %v1543_v37 = vor.u32 %v1966_v26, %v1540_v28  ;;  %v1756_v15 = vld [vmem:[#allocation4 + $0x40] sm:$0xf]  ;;  %v2020_v18 = vld [vmem:[#allocation4 + $0x44] sm:$0xf]  ;;  %v1758_v19 = vld [vmem:[#allocation4 + $0x48] sm:$0xf0] }
  0x54   :  { %831 = vmatpush.bf16.msra.mxu3 %v1639_v44  ;;  %v1660_v44 = vld [vmem:[#allocation2 + $0x298] sm:$0xf0]  ;;  %v1761_v21 = vor.u32 %v2020_v18, %v1758_v19  ;;  %v1748_v22 = vld [vmem:[#allocation4 + $0x30] sm:$0xf]  ;;  %v2019_v23 = vld [vmem:[#allocation4 + $0x34] sm:$0xf0] }
  0x55   :  { %818 = vmatpush.bf16.msra.mxu1 %v1575_v49  ;;  %v1588_v49 = vld [vmem:[#allocation2 + $0x208] sm:$0xf0]  ;;  %v1663_v54 = vor.u32 %v1996_v43, %v1660_v44  ;;  %v2018_v5 = vld [vmem:[#allocation4 + $0x34] sm:$0xf]  ;;  %v2017_v28 = vld [vmem:[#allocation4 + $0x24] sm:$0xf0] }
  0x56   :  { %806 = vmatpush.bf16.msra.mxu0 %v1503_v53  ;;  %v1535_v53 = vor.u32 %v1964_v40, %v1532_v42  ;;  %v1591_v59 = vor.u32 %v1978_v48, %v1588_v49  ;;  %v2016_v29 = vld [vmem:[#allocation4 + $0x24] sm:$0xf]  ;;  %v1732_v34 = vld [vmem:[#allocation4 + $0x10] sm:$0xf]  ;;  %v2015_v35 = vld [vmem:[#allocation4 + $0x14] sm:$0xf0] }
  0x57   :  { %844 = vmatpush.bf16.msrb.mxu2 %v1703_v50  ;;  %v2010_v50 = vld [vmem:[#allocation2 + $0x304] sm:$0xf]  ;;  %v1724_v43 = vld [vmem:[#allocation4] sm:$0xf]  ;;  %v2013_v44 = vld [vmem:[#allocation4 + $0x4] sm:$0xf0] }
  0x58   :  { %832 = vmatpush.bf16.msra.mxu3 %v1631_v57  ;;  %v1524_v57 = vld [vmem:[#allocation2 + $0x188] sm:$0xf0]  ;;  %v1719_v62 = vor.u32 %v2010_v50, %v1716_v51  ;;  %v2014_v36 = vld [vmem:[#allocation4 + $0x14] sm:$0xf]  ;;  %v1725_v46 = vor.u32 %v2013_v44, %v1724_v43  ;;  %v1726_v47 = vld [vmem:[#allocation4 + $0x8] sm:$0xf0] }
  0x59   :  { %819 = vmatpush.bf16.msra.mxu1 %v1567_v63  ;;  %v1527_v63 = vor.u32 %v1962_v56, %v1524_v57  ;;  %v2215_v50 = vld [vmem:[%s2281_s2] sm:$0x3]  ;;  %v2043_v56 = vld [vmem:[#allocation4 + $0xf4] sm:$0xf0]  ;;  %v2042_v57 = vld [vmem:[#allocation4 + $0xf4] sm:$0xf] }
  0x5a   :  { %807 = vmatpush.bf16.msra.mxu0 %v1495_v3  ;;  %v1781_v3 = vor.u32 %v2027_v2, %v1780_v1  ;;  %v2041_v1 = vld [vmem:[#allocation4 + $0xe4] sm:$0xf0]  ;;  %v2040_v2 = vld [vmem:[#allocation4 + $0xe4] sm:$0xf] }
  0x5b   :  { %845 = vmatpush.bf16.msrb.mxu2 %v1695_v0  ;;  %v1655_v0 = vor.u32 %v1994_v60, %v1652_v61  ;;  %v1846_v61 = vld [vmem:[#allocation4 + $0xf8] sm:$0xf0] }
  0x5c   :  { %833 = vmatpush.bf16.msra.mxu3 %v1623_v9  ;;  %v1785_v9 = vor.u32 %v2026_v7, %v1782_v8  ;;  %v1838_v8 = vld [vmem:[#allocation4 + $0xe8] sm:$0xf0] }
  0x5d   :  { %820 = vmatpush.bf16.msra.mxu1 %v1559_v58  ;;  %v2022_v58 = vld [vmem:[#allocation4 + $0x54] sm:$0xf] }
  0x5e   :  { %808 = vmatpush.bf16.msra.mxu0 %v1487_v16  ;;  %v2021_v16 = vld [vmem:[#allocation4 + $0x44] sm:$0xf0] }
  0x5f   :  { %846 = vmatpush.bf16.msrb.mxu2 %v1687_v14  ;;  %v1766_v14 = vld [vmem:[#allocation4 + $0x58] sm:$0xf0] }
  0x60   :  { %834 = vmatpush.bf16.msra.mxu3 %v1615_v20  ;;  %v1769_v17 = vor.u32 %v2022_v58, %v1766_v14  ;;  %v1757_v20 = vor.u32 %v2021_v16, %v1756_v15  ;;  %v1820_v15 = vld [vmem:[#allocation4 + $0xc0] sm:$0xf]  ;;  %v2037_v16 = vld [vmem:[#allocation4 + $0xc4] sm:$0xf0] }
  0x61   :  { %821 = vmatpush.bf16.msra.mxu1 %v1551_v24  ;;  %v1750_v24 = vld [vmem:[#allocation4 + $0x38] sm:$0xf0]  ;;  %v1821_v19 = vor.u32 %v2037_v16, %v1820_v15  ;;  %v2051_v15 = vld [vmem:[%s2284_s5 + $0x38] sm:$0xff] }
  0x62   :  { %809 = vmatpush.bf16.msra.mxu0 %v1479_v27  ;;  %v1753_v26 = vor.u32 %v2018_v5, %v1750_v24  ;;  %v1740_v27 = vld [vmem:[#allocation4 + $0x20] sm:$0xf]  ;;  %v1812_v24 = vld [vmem:[#allocation4 + $0xb0] sm:$0xf] }
  0x63   :  { %847 = vmatpush.bf16.msrb.mxu2 %v1679_v25  ;;  %v1749_v25 = vor.u32 %v2019_v23, %v1748_v22  ;;  %v1741_v30 = vor.u32 %v2017_v28, %v1740_v27  ;;  %v1814_v28 = vld [vmem:[#allocation4 + $0xb8] sm:$0xf0]  ;;  %v2059_v16 = vld [vmem:[%s2284_s5 + $0x78] sm:$0xff] }
  0x64   :  { %835 = vmatpush.bf16.msra.mxu3 %v1607_v31  ;;  %v1742_v31 = vld [vmem:[#allocation4 + $0x28] sm:$0xf0] }
  0x65   :  { %822 = vmatpush.bf16.msra.mxu1 %v1543_v37  ;;  %v1745_v33 = vor.u32 %v2016_v29, %v1742_v31  ;;  %v1733_v37 = vor.u32 %v2015_v35, %v1732_v34  ;;  %v1804_v34 = vld [vmem:[#allocation4 + $0xa0] sm:$0xf]  ;;  %v2033_v35 = vld [vmem:[#allocation4 + $0xa4] sm:$0xf0] }
  0x66   :  { %810 = vmatpush.bf16.msra.mxu0 %v1471_v41 }
  0x67   :  { %848 = vmatpush.bf16.msrb.mxu2 %v1671_v38  ;;  %v1734_v38 = vld [vmem:[#allocation4 + $0x18] sm:$0xf0] }
  0x68   :  { %836 = vmatpush.bf16.msra.mxu3 %v1599_v45  ;;  %v1737_v41 = vor.u32 %v2014_v36, %v1734_v38  ;;  %v2012_v45 = vld [vmem:[#allocation4 + $0x4] sm:$0xf] }
  0x69   :  { %823 = vmatpush.bf16.msra.mxu1 %v1535_v53  ;;  %v1729_v48 = vor.u32 %v2012_v45, %v1726_v47  ;;  %v2032_v38 = vld [vmem:[#allocation4 + $0xa4] sm:$0xf]  ;;  %v1796_v45 = vld [vmem:[#allocation4 + $0x90] sm:$0xf]  ;;  %v2030_v47 = vld [vmem:[#allocation4 + $0x94] sm:$0xf] }
  0x6a   :  { %811 = vmatpush.bf16.msra.mxu0 %v1463_v55  ;;  %v1844_v55 = vld [vmem:[#allocation4 + $0xf0] sm:$0xf] }
  0x6b   :  { %849 = vmatpush.bf16.msrb.mxu2 %v1663_v54  ;;  %v1845_v60 = vor.u32 %v2043_v56, %v1844_v55  ;;  %v2029_v55 = vld [vmem:[#allocation4 + $0x84] sm:$0xf0]  ;;  %v2028_v56 = vld [vmem:[#allocation4 + $0x84] sm:$0xf] }
  0x6c   :  { %837 = vmatpush.bf16.msra.mxu3 %v1591_v59  ;;  %v189_v59 = vperm.slane %v2215_v50, 0 }
  0x6d   :  { %824 = vmatpush.bf16.msra.mxu1 %v1527_v63  ;;  %812 = vmatmul.bf16.vlgmr.msra.gmra.mxu0 %v2179_v52  ;;  %v1773_v52 = vor.u32 %v2025_v11, %v1772_v10  ;;  %v1841_v10 = vor.u32 %v2040_v2, %v1838_v8 }
  0x6e   :  { %863 = vmatpush.bf16.msrb.mxu0 %v1719_v62  ;;  %v1849_v62 = vor.u32 %v2042_v57, %v1846_v61 }
  0x6f   :  { %838 = vmatmul.bf16.vlgmr.msra.gmra.mxu3 %v2198_v32  ;;  %850 = vmatpush.bf16.msrb.mxu2 %v1655_v0  ;;  %v1774_v32 = vld [vmem:[#allocation4 + $0x68] sm:$0xf0]  ;;  %v1836_v0 = vld [vmem:[#allocation4 + $0xe0] sm:$0xf] }
  0x70   :  { %825 = vmatmul.bf16.vlgmr.msra.gmra.mxu1 %v2183_v4  ;;  %v1777_v13 = vor.u32 %v2024_v12, %v1774_v32  ;;  %v1764_v4 = vld [vmem:[#allocation4 + $0x50] sm:$0xf]  ;;  %1084 = vmatpush.bf16.msrb.mxu3 %v1845_v60  ;;  %v1837_v7 = vor.u32 %v2041_v1, %v1836_v0  ;;  %v2039_v32 = vld [vmem:[#allocation4 + $0xd4] sm:$0xf0] }
  0x71   :  { %1071 = vmatpush.bf16.msrb.mxu1 %v1781_v3 }
  0x72   :  { %851 = vmatmul.bf16.vlgmr.msrb.gmra.mxu2 %v2200_v39  ;;  %1097 = vmatpush.bf16.msra.mxu0 %v1785_v9  ;;  %v2023_v39 = vld [vmem:[#allocation4 + $0x54] sm:$0xf0] }
  0x73   :  { %1110 = vmatpush.bf16.msra.mxu2 %v1849_v62 }
  0x74   :  { %1085 = vmatpush.bf16.msrb.mxu3 %v1837_v7 }
  0x75   :  { %1072 = vmatpush.bf16.msrb.mxu1 %v1773_v52  ;;  %v1828_v52 = vld [vmem:[#allocation4 + $0xd0] sm:$0xf] }
  0x76   :  { %1098 = vmatpush.bf16.msra.mxu0 %v1777_v13  ;;  %v2038_v13 = vld [vmem:[#allocation4 + $0xd4] sm:$0xf] }
  0x77   :  { %1111 = vmatpush.bf16.msra.mxu2 %v1841_v10 }
  0x7a   :  { %1099 = vmatpush.bf16.msra.mxu0 %v1769_v17  ;;  %v2036_v17 = vld [vmem:[#allocation4 + $0xc4] sm:$0xf] }
  0x7d   :  { %1721 = vmatmul.msk.bf16.vlgmr.msrb.gmra.mxu0 %vm683_vm0, %v2194_v6  ;;  %v1765_v6 = vor.u32 %v2023_v39, %v1764_v4  ;;  %v1829_v4 = vor.u32 %v2039_v32, %v1828_v52  ;;  %v1830_v39 = vld [vmem:[#allocation4 + $0xd8] sm:$0xf0] }
  0x7e   :  { %1100 = vmatpush.bf16.msra.mxu0 %v1761_v21 }
  0x7f   :  { %1073 = vmatpush.bf16.msrb.mxu1 %v1765_v6  ;;  %v1833_v6 = vor.u32 %v2038_v13, %v1830_v39  ;;  %1086 = vmatpush.bf16.msrb.mxu3 %v1829_v4 }
  0x81   :  { %1112 = vmatpush.bf16.msra.mxu2 %v1833_v6 }
  0x82   :  { %1101 = vmatpush.bf16.msra.mxu0 %v1753_v26  ;;  %v2034_v26 = vld [vmem:[#allocation4 + $0xb4] sm:$0xf] }
  0x83   :  { %1074 = vmatpush.bf16.msrb.mxu1 %v1757_v20  ;;  %v1822_v20 = vld [vmem:[#allocation4 + $0xc8] sm:$0xf0]  ;;  %1087 = vmatpush.bf16.msrb.mxu3 %v1821_v19  ;;  %v1817_v31 = vor.u32 %v2034_v26, %v1814_v28  ;;  %v2049_v19 = vld [vmem:[%s2284_s5 + $0x28] sm:$0xff] }
  0x84   :  { %v1825_v22 = vor.u32 %v2036_v17, %v1822_v20  ;;  %v2050_v17 = vld [vmem:[%s2284_s5 + $0x30] sm:$0xff]  ;;  %v2057_v20 = vld [vmem:[%s2284_s5 + $0x68] sm:$0xff] }
  0x86   :  { %1102 = vmatpush.bf16.msra.mxu0 %v1745_v33  ;;  %1113 = vmatpush.bf16.msra.mxu2 %v1825_v22  ;;  %v2056_v22 = vld [vmem:[%s2284_s5 + $0x60] sm:$0xff] }
  0x87   :  { %1075 = vmatpush.bf16.msrb.mxu1 %v1749_v25  ;;  %v2035_v25 = vld [vmem:[#allocation4 + $0xb4] sm:$0xf0] }
  0x88   :  { %v1813_v27 = vor.u32 %v2035_v25, %v1812_v24  ;;  %v2046_v24 = vld [vmem:[%s2284_s5 + $0x10] sm:$0xff] }
  0x89   :  { %v2054_v25 = vld [vmem:[%s2284_s5 + $0x50] sm:$0xff] }
  0x8a   :  { %1103 = vmatpush.bf16.msra.mxu0 %v1737_v41  ;;  %1088 = vmatpush.bf16.msrb.mxu3 %v1813_v27 }
  0x8b   :  { %1076 = vmatpush.bf16.msrb.mxu1 %v1741_v30  ;;  %1114 = vmatpush.bf16.msra.mxu2 %v1817_v31  ;;  %v2053_v31 = vld [vmem:[%s2284_s5 + $0x48] sm:$0xff] }
  0x8e   :  { %1104 = vmatpush.bf16.msra.mxu0 %v1729_v48 }
  0x8f   :  { %1077 = vmatpush.bf16.msrb.mxu1 %v1733_v37  ;;  %v1805_v37 = vor.u32 %v2033_v35, %v1804_v34  ;;  %v2052_v34 = vld [vmem:[%s2284_s5 + $0x40] sm:$0xff] }
  0x90   :  { %v905_v35 = vld [vmem:[%s2283_s4] sm:$0x3] }
  0x91   :  { %1089 = vmatpush.bf16.msrb.mxu3 %v1805_v37  ;;  %v908_v37 = vperm.slane %v905_v35, 1 }
  0x93   :  { %1078 = vmatpush.bf16.msrb.mxu1 %v1725_v46  ;;  %v2031_v46 = vld [vmem:[#allocation4 + $0x94] sm:$0xf0] }
  0x94   :  { %v1797_v48 = vor.u32 %v2031_v46, %v1796_v45 }
  0x96   :  { %1090 = vmatpush.bf16.msrb.mxu3 %v1797_v48 }
  0x97   :  { %1259 = vmatpush.bf16.msra.mxu1 %v2051_v15 }
  0x9b   :  { %1260 = vmatpush.bf16.msra.mxu1 %v2050_v17 }
  0x9f   :  { %1261 = vmatpush.bf16.msra.mxu1 %v2049_v19 }
  0xaa   :  { %v696_v40 = vpop.f32.mrf.mxu0 }
  0xab   :  { %v697_v3 = vadd.f32 %v696_v40, %v189_v59  ;;  %v1806_v40 = vld [vmem:[#allocation4 + $0xa8] sm:$0xf0] }
  0xac   :  { %v1790_v59 = vld [vmem:[#allocation4 + $0x88] sm:$0xf0] }
  0xad   :  { %v709_v42 = vpop.f32.mrf.mxu1  ;;  %v1793_v60 = vor.u32 %v2028_v56, %v1790_v59 }
  0xae   :  { %v710_v11 = vadd.f32 %v709_v42, %v697_v3  ;;  %v1809_v42 = vor.u32 %v2032_v38, %v1806_v40 }
  0xb0   :  { %1115 = vmatpush.bf16.msra.mxu2 %v1809_v42 }
  0xb1   :  { %v722_v49 = vpop.f32.mrf.mxu2 }
  0xb2   :  { %v735_v51 = vpop.f32.mrf.mxu3  ;;  %v698_v53 = vpop.f32.mrf.mxu0  ;;  %v723_v12 = vadd.f32 %v722_v49, %v710_v11  ;;  %v1798_v49 = vld [vmem:[#allocation4 + $0x98] sm:$0xf0] }
  0xb3   :  { %v1801_v53 = vor.u32 %v2030_v47, %v1798_v49 }
  0xb4   :  { %v736_v14 = vadd.f32 %v735_v51, %v723_v12 }
  0xb5   :  { %v711_v54 = vpop.f32.mrf.mxu1  ;;  %1116 = vmatpush.bf16.msra.mxu2 %v1801_v53  ;;  %v1287_v53 = vlaneseq }
  0xb6   :  { %v1788_v54 = vld [vmem:[#allocation4 + $0x80] sm:$0xf] }
  0xb7   :  { %v1789_v57 = vor.u32 %v2029_v55, %v1788_v54  ;;  %v2064_v55 = vld [vmem:[%s2285_s6] ss:$0 sm:$0xff]  ;;  %v1288_v56 = vand.u32 127, %v1287_v53 }
  0xb9   :  { %v724_v63 = vpop.f32.mrf.mxu2  ;;  %1091 = vmatpush.bf16.msrb.mxu3 %v1789_v57  ;;  %1117 = vmatpush.bf16.msra.mxu2 %v1793_v60  ;;  %vm1289_vm1 = vcmp.lt.s32.totalorder %v1288_v56, 10 }
  0xba   :  { %v737_v9 = vpop.f32.mrf.mxu3  ;;  %v190_v63 = vperm.slane %v2215_v50, 1 }
  0xbd   :  { %1272 = vmatpush.bf16.msra.mxu3 %v2059_v16 }
  0xc1   :  { %v774_v58 = vpop.f32.mrf.mxu2 }
  0xc9   :  { %v776_v30 = vpop.f32.mrf.mxu2 }
  0xca   :  { %v748_v18 = vpop.f32.mrf.mxu0  ;;  %v2045_v30 = vld [vmem:[%s2284_s5 + $0x8] sm:$0xff] }
  0xcb   :  { %v749_v21 = vadd.f32 %v748_v18, %v736_v14  ;;  %v2058_v18 = vld [vmem:[%s2284_s5 + $0x70] sm:$0xff] }
  0xcc   :  { %1273 = vmatpush.bf16.msra.mxu3 %v2058_v18 }
  0xcd   :  { %v761_v23 = vpop.f32.mrf.mxu1 }
  0xce   :  { %v762_v5 = vadd.f32 %v761_v23, %v749_v21  ;;  %v2048_v21 = vld [vmem:[%s2284_s5 + $0x20] sm:$0xff]  ;;  %v2047_v23 = vld [vmem:[%s2284_s5 + $0x18] sm:$0xff] }
  0xcf   :  { %1262 = vmatpush.bf16.msra.mxu1 %v2048_v21 }
  0xd0   :  { %v775_v29 = vadd.f32 %v774_v58, %v762_v5  ;;  %1274 = vmatpush.bf16.msra.mxu3 %v2057_v20  ;;  %v2055_v5 = vld [vmem:[%s2284_s5 + $0x58] sm:$0xff] }
  0xd2   :  { %v869_v33 = vmax.f32 %v775_v29, 0.0  ;;  %v750_v36 = vpop.f32.mrf.mxu0  ;;  %v787_v43 = vpop.f32.mrf.mxu3 }
  0xd3   :  { %v788_v0 = vadd.f32 %v787_v43, %v190_v63  ;;  %1263 = vmatpush.bf16.msra.mxu1 %v2047_v23  ;;  %v907_v36 = vperm.slane %v905_v35, 0 }
  0xd4   :  { %v871_v41 = vpack.c.bf16 %v869_v33, %v869_v33  ;;  %1275 = vmatpush.bf16.msra.mxu3 %v2056_v22  ;;  %v2044_v33 = vld [vmem:[%s2284_s5] sm:$0xff] }
  0xd5   :  { %v763_v44 = vpop.f32.mrf.mxu1  ;;  %v800_v51 = vpop.f32.mrf.mxu2 }
  0xd6   :  { %1079 = vmatmul.bf16.vlgmr.msrb.gmra.mxu1 %v871_v41  ;;  %1105 = vmatmul.bf16.vlgmr.msra.gmra.mxu0 %v871_v41  ;;  %v801_v2 = vadd.f32 %v800_v51, %v788_v0 }
  0xd7   :  { %1264 = vmatpush.bf16.msra.mxu1 %v2046_v24 }
  0xd8   :  { %1276 = vmatpush.bf16.msra.mxu3 %v2055_v5 }
  0xda   :  { %v789_v61 = vpop.f32.mrf.mxu3 }
  0xdb   :  { %1265 = vmatpush.bf16.msra.mxu1 %v2045_v30 }
  0xdc   :  { %1277 = vmatpush.bf16.msra.mxu3 %v2054_v25 }
  0xdd   :  { %v802_v62 = vpop.f32.mrf.mxu2 }
  0xdf   :  { %1266 = vmatpush.bf16.msra.mxu1 %v2044_v33 }
  0xe0   :  { %1278 = vmatpush.bf16.msra.mxu3 %v2053_v31 }
  0xe4   :  { %1279 = vmatpush.bf16.msra.mxu3 %v2052_v34 }
  0xea   :  { %v813_v1 = vpop.f32.mrf.mxu0 }
  0xeb   :  { %v814_v7 = vadd.f32 %v813_v1, %v801_v2 }
  0xed   :  { %v826_v3 = vpop.f32.mrf.mxu1 }
  0xee   :  { %v827_v10 = vadd.f32 %v826_v3, %v814_v7 }
  0xf2   :  { %v839_v8 = vpop.f32.mrf.mxu3  ;;  %v815_v9 = vpop.f32.mrf.mxu0 }
  0xf3   :  { %v840_v12 = vadd.f32 %v839_v8, %v827_v10 }
  0xf5   :  { %v852_v11 = vpop.f32.mrf.mxu2  ;;  %v828_v52 = vpop.f32.mrf.mxu1 }
  0xf6   :  { %v853_v32 = vadd.f32 %v852_v11, %v840_v12 }
  0xfa   :  { %v841_v13 = vpop.f32.mrf.mxu3  ;;  %v865_v4 = vpop.f32.mrf.mxu0 }
  0xfb   :  { %v866_v39 = vadd.f32 %v865_v4, %v853_v32 }
  0xfd   :  { %v854_v58 = vpop.f32.mrf.mxu2  ;;  %v870_v6 = vmax.f32 %v866_v39, 0.0 }
  0xff   :  { %v872_v14 = vpack.c.bf16 %v870_v6, %v870_v6 }
 0x101   :  { %1092 = vmatmul.bf16.vlgmr.msrb.gmra.mxu3 %v872_v14  ;;  %1118 = vmatmul.bf16.vlgmr.msra.gmra.mxu2 %v872_v14 }
 0x102   :  { %v867_v50 = vpop.f32.mrf.mxu0 }
 0x153   :  { %v1080_v26 = vpop.f32.mrf.mxu1  ;;  %v1106_v27 = vpop.f32.mrf.mxu0 }
 0x154   :  { %v1081_v38 = vadd.f32 %v1080_v26, %v907_v36  ;;  %v1107_v40 = vadd.f32 %v1106_v27, %v908_v37 }
 0x15b   :  { %v1082_v28 = vpop.f32.mrf.mxu1  ;;  %v1108_v29 = vpop.f32.mrf.mxu0 }
 0x184   :  { %v1093_v41 = vpop.f32.mrf.mxu3  ;;  %v1119_v42 = vpop.f32.mrf.mxu2 }
 0x185   :  { %v1094_v43 = vadd.f32 %v1093_v41, %v1081_v38  ;;  %v1120_v44 = vadd.f32 %v1119_v42, %v1107_v40 }
 0x187   :  { %v1123_v45 = vmax.f32 %v1094_v43, 0.0  ;;  %v1124_v46 = vmax.f32 %v1120_v44, 0.0 }
 0x189   :  { %v1125_v47 = vpack.c.bf16 %v1123_v45, %v1123_v45  ;;  %v1126_v48 = vpack.c.bf16 %v1124_v46, %v1124_v46 }
 0x18b   :  { %1267 = vmatmul.bf16.vlgmr.msra.gmra.mxu1 %v1125_v47  ;;  %1280 = vmatmul.bf16.vlgmr.msra.gmra.mxu3 %v1126_v48 }
 0x18c   :  { %v1095_v49 = vpop.f32.mrf.mxu3  ;;  %v1121_v51 = vpop.f32.mrf.mxu2 }
 0x208   :  { %v1268_v54 = vpop.f32.mrf.mxu1 }
 0x209   :  { %v1269_v57 = vadd.f32 %v2064_v55, %v1268_v54 }
 0x20e   :  { %v1281_v59 = vpop.f32.mrf.mxu3 }
 0x20f   :  { %v1282_v60 = vadd.f32 %v1281_v59, %v1269_v57 }
 0x210   :  { %v1270_v61 = vpop.f32.mrf.mxu1 }
 0x211   :  { %v1285_v62 = vpack.c.bf16 %v1282_v60, %v1282_v60  ;;  %v1290_v63 = vsel %vm1289_vm1, %v1282_v60, -inf }
 0x212   :  { %v1292_v0 = vsel %vm1291_vm2, %v1290_v63, -inf }
 0x213   :  { %1286 = vst [vmem:[%s2287_s8] sm:$0x1] %v1285_v62  ;;  %1293 = vmax.xlane.f32.xlu0 %v1292_v0 }
 0x216   :  { %v1283_v1 = vpop.f32.mrf.mxu3 }
 0x286   :  { %v1294_v2 = vpop.xlane.xlu0 %1293 }
 0x287   :  { %v1295_v3 = vsub.f32 %v1290_v63, %v1294_v2 }
 0x289   :  { %v1296_v7 = vmul.f32 1.442695, %v1295_v3 }
 0x28b   :  { %2065 = vpow2.f32 %v1296_v7 }
 0x291   :  { %v2066_v8 = vpop.eup %2065 }
 0x292   :  { %v1298_v9 = vsel %vm1291_vm2, %v2066_v8, 0.0 }
 0x293   :  { %1299 = vadd.xlane.f32.xlu0 %v1298_v9 }
 0x306   :  { %v1300_v10 = vpop.xlane.xlu0 %1299 }
 0x307   :  { %2067 = vrcp.f32 %v1300_v10  ;;  %v1312_v32 = vand.u32 2147483648, %v1300_v10  ;;  %v1310_v4 = vand.u32 2147483647, %v1300_v10  ;;  %vm1306_vm4 = vweird.f32 %v1300_v10 }
 0x309   :  { %v1313_v58 = vor.u32 1.1754944e-38, %v1312_v32  ;;  %vm1311_vm6 = vcmp.eq.f32.partialorder %v1310_v4, 8.507059e+37 }
 0x30d   :  { %v2068_v11 = vpop.eup %2067 }
 0x30e   :  { %v1302_v12 = vmul.f32 %v2068_v11, %v1300_v10  ;;  %vm1307_vm3 = vweird.f32 %v2068_v11 }
 0x30f   :  { %vm1308_vm5 = vmor %vm1306_vm4, %vm1307_vm3 }
 0x310   :  { %v1303_v52 = vsub.f32 1.0, %v1302_v12 }
 0x312   :  { %v1304_v13 = vmul.f32 %v2068_v11, %v1303_v52 }
 0x314   :  { %v1305_v39 = vadd.f32 %v2068_v11, %v1304_v13 }
 0x316   :  { %v1309_v6 = vsel %vm1308_vm5, %v2068_v11, %v1305_v39 }
 0x317   :  { %v1314_v14 = vsel %vm1311_vm6, %v1313_v58, %v1309_v6 }
 0x318   :  { %v1315_v50 = vmul.f32 %v2066_v8, %v1314_v14 }
 0x31a   :  { %v1316_v15 = vpack.c.bf16 %v1315_v50, %v1315_v50 }
 0x31c   :  { %1317 = vst [vmem:[%s2286_s7] sm:$0x1] %v1316_v15 }
 0x31d   :  { %1326 = vsyncpa [#allocation3], 1 }
 0x31e   :  { %1327 = vsyncpa [#allocation5], 1 }

</bundles_post_ra>
